<compile_context>
chip_gen: v7x
topology: tpu7x:2x2x1
jax: 0.10.0
libtpu: 0.0.40
codegen_flags: <defaults>
</compile_context>

<pallas_src>
import functools

import jax
import jax.numpy as jnp
from jax.experimental import pallas as pl
from jax.experimental.pallas import tpu as pltpu


def _round_up(x, m):
    return (x + m - 1) // m * m


def _pick_block_m(n_pad, d_pad, itemsize, vmem_budget_bytes=44 * 1024 * 1024):
    """Largest MXU-friendly row tile whose live [TM, N] slabs fit a v7x-safe budget."""
    for tm in (512, 256, 128):
        if tm > n_pad or n_pad % tm != 0:
            continue
        live = 5 * tm * n_pad * 4                 # f32 [TM, N_pad] temporaries
        resident = 2 * n_pad * d_pad * itemsize   # contrast features (worst-case dbl-buffered)
        anchors = 2 * tm * d_pad * itemsize       # double-buffered anchor tile
        labels = 2 * (n_pad + tm) * 4
        if live + resident + anchors + labels <= vmem_budget_bytes:
            return tm
    # TODO(synk): for N where even TM=128 with the full contrast block exceeds the
    # budget, add column tiling of the Gram matmul / online softmax over column blocks.
    return 128


def _supcon_block_kernel(lab_row_ref, lab_col_ref, anchor_ref, contrast_ref, out_ref,
                         *, inv_temperature, n_valid, block_m):
    blk = pl.program_id(0)

    a = anchor_ref[...]                                   # [TM, Dp]   (bf16)
    c = contrast_ref[...]                                 # [Np, Dp]   (bf16, grid-resident)

    # NT Gram matmul on the MXU with f32 accumulation: [TM, Np]
    logits = jax.lax.dot_general(
        a, c,
        dimension_numbers=(((1,), (1,)), ((), ())),
        preferred_element_type=jnp.float32) * inv_temperature

    tm, npad = logits.shape
    col = jax.lax.broadcasted_iota(jnp.int32, (tm, npad), 1)
    row = jax.lax.broadcasted_iota(jnp.int32, (tm, npad), 0) + blk * block_m

    col_valid = col < n_valid                              # drop zero-padded columns
    not_self = row != col                                  # self-contrast diagonal
    keep = jnp.logical_and(col_valid, not_self)            # logits_mask, never hits HBM

    # Numerical-stability shift: max over valid columns (incl. self, as in torch).
    # Any finite shift cancels exactly in log_prob, so this matches the reference.
    neg_big = jnp.float32(-1e30)
    shift = jnp.max(jnp.where(col_valid, logits, neg_big), axis=1, keepdims=True)
    logits = logits - shift

    e = jnp.exp(logits)
    denom = jnp.sum(jnp.where(keep, e, 0.0), axis=1, keepdims=True)   # [TM, 1]
    log_prob = logits - jnp.log(denom)

    # Positives mask rebuilt in-kernel from labels (no [N, N] DMA).
    same = lab_row_ref[...] == lab_col_ref[...]            # [TM,1] == [1,Np] -> [TM,Np]
    pos = jnp.where(jnp.logical_and(same, keep), 1.0, 0.0)

    pos_cnt = jnp.sum(pos, axis=1, keepdims=True)          # [TM, 1]
    numer = jnp.sum(pos * log_prob, axis=1, keepdims=True) # [TM, 1]

    # Guard anchors with zero positives (the torch original would produce NaN here).
    mean_lp = numer * pl.reciprocal(jnp.maximum(pos_cnt, 1.0), approx=True)

    row1 = jax.lax.broadcasted_iota(jnp.int32, (tm, 1), 0) + blk * block_m
    valid = jnp.logical_and(row1 < n_valid, pos_cnt > 0.0)
    per_anchor = jnp.where(valid, mean_lp, 0.0)

    # Lane-dense per-block partial sum; the wrapper applies -(T / base_T) and the 1/N mean.
    partial = jnp.sum(per_anchor)
    out_ref[...] = jnp.zeros_like(out_ref) + partial


def supcon_loss(features, labels=None, mask=None,
                temperature=0.07, contrast_mode='all', base_temperature=0.07,
                compute_dtype=jnp.bfloat16):
    """JAX/Pallas equivalent of SupConLoss.forward (contrast_mode='all')."""
    if features.ndim < 3:
        raise ValueError('`features` needs to be [bsz, n_views, ...]')
    if features.ndim > 3:
        features = features.reshape(features.shape[0], features.shape[1], -1)
    if contrast_mode != 'all':
        # TODO(synk): contrast_mode='one' (anchor = view 0 only) not wired up.
        raise ValueError('only contrast_mode="all" implemented')

    bsz, n_views, dim = features.shape

    if labels is not None and mask is not None:
        raise ValueError('Cannot define both `labels` and `mask`')
    if mask is not None:
        # TODO(synk): explicit precomputed [bsz, bsz] mask path not supported by the
        # label-compare kernel; pass `labels` instead.
        raise NotImplementedError('explicit `mask` input not supported; pass labels')
    if labels is None:
        # eye(bsz) base mask == every sample is its own class
        labels = jnp.arange(bsz, dtype=jnp.int32)
    labels = labels.reshape(-1).astype(jnp.int32)
    if labels.shape[0] != bsz:
        raise ValueError('Num of labels does not match num of features')

    n = n_views * bsz
    # torch.cat(torch.unbind(features, dim=1), dim=0) -> view-major stacking
    cf = jnp.transpose(features, (1, 0, 2)).reshape(n, dim).astype(compute_dtype)
    lab_n = jnp.tile(labels, (n_views,))                       # [N]

    # Pad: D to a lane multiple (MXU-friendly K), N to the row-tile multiple.
    d_pad = _round_up(dim, 128)
    n_pad = _round_up(n, 128)
    itemsize = jnp.dtype(compute_dtype).itemsize
    tm = _pick_block_m(n_pad, d_pad, itemsize)
    num_blocks = n_pad // tm

    cf_pad = jnp.zeros((n_pad, d_pad), compute_dtype).at[:n, :dim].set(cf)
    lab_pad = jnp.full((n_pad,), -1, dtype=jnp.int32).at[:n].set(lab_n)
    lab_row = lab_pad.reshape(n_pad, 1)
    lab_col = lab_pad.reshape(1, n_pad)

    est = (5 * tm * n_pad * 4 + 2 * n_pad * d_pad * itemsize
           + 2 * tm * d_pad * itemsize + 2 * (n_pad + tm) * 4 + 2 * 8 * 128 * 4)
    vmem_limit = int(min(60 * 1024 * 1024, max(16 * 1024 * 1024, 2 * est)))

    kernel = functools.partial(
        _supcon_block_kernel,
        inv_temperature=1.0 / float(temperature),
        n_valid=n,
        block_m=tm)

    out = pl.pallas_call(
        kernel,
        out_shape=jax.ShapeDtypeStruct((num_blocks * 8, 128), jnp.float32),
        grid=(num_blocks,),
        in_specs=[
            pl.BlockSpec((tm, 1), lambda i: (i, 0)),          # row-block labels
            pl.BlockSpec((1, n_pad), lambda i: (0, 0)),       # all labels (resident)
            pl.BlockSpec((tm, d_pad), lambda i: (i, 0)),      # anchor feature rows
            pl.BlockSpec((n_pad, d_pad), lambda i: (0, 0)),   # full contrast features (resident)
        ],
        out_specs=pl.BlockSpec((8, 128), lambda i: (i, 0)),
        compiler_params=pltpu.CompilerParams(
            dimension_semantics=("parallel",),
            vmem_limit_bytes=vmem_limit),
    )(lab_row, lab_col, cf_pad, cf_pad)

    partials = out[::8, 0]                                    # [num_blocks]
    loss = -(float(temperature) / float(base_temperature)) * jnp.sum(partials) / n
    return loss


def _supcon_loss_ref(features, labels, temperature=0.07, base_temperature=0.07):
    """Pure-JAX f32 reference mirroring the PyTorch code, for verification."""
    bsz, n_views, dim = features.shape
    labels = labels.reshape(-1, 1)
    mask = (labels == labels.T).astype(jnp.float32)
    cf = jnp.transpose(features, (1, 0, 2)).reshape(n_views * bsz, dim)
    logits = jnp.dot(cf, cf.T) / temperature
    logits = logits - jnp.max(logits, axis=1, keepdims=True)
    mask = jnp.tile(mask, (n_views, n_views))
    n = n_views * bsz
    logits_mask = 1.0 - jnp.eye(n, dtype=jnp.float32)
    mask = mask * logits_mask
    exp_logits = jnp.exp(logits) * logits_mask
    log_prob = logits - jnp.log(exp_logits.sum(1, keepdims=True))
    mean_log_prob_pos = (mask * log_prob).sum(1) / mask.sum(1)
    loss = -(temperature / base_temperature) * mean_log_prob_pos
    return loss.mean()


if __name__ == "__main__":
    key = jax.random.PRNGKey(0)

    # Case 1: single row block (column padding exercised): bsz=8, n_views=2, dim=32
    k1, k2, k3, k4 = jax.random.split(key, 4)
    bsz, n_views, dim = 8, 2, 32
    feats = jax.random.normal(k1, (bsz, n_views, dim), dtype=jnp.float32)
    feats = feats / jnp.linalg.norm(feats, axis=-1, keepdims=True)
    labels = jax.random.randint(k2, (bsz,), 0, 3)

    loss = jax.block_until_ready(supcon_loss(feats, labels=labels))
    ref = _supcon_loss_ref(feats, labels)
    # bf16 Gram matmul + approx reciprocal -> relaxed tolerance (logits scaled by 1/T).
    assert jnp.allclose(loss, ref, rtol=5e-2, atol=5e-2), (loss, ref)

    # Case 2: multiple row blocks + padded anchor rows: bsz=96, n_views=2, dim=32
    bsz2 = 96
    feats2 = jax.random.normal(k3, (bsz2, n_views, dim), dtype=jnp.float32)
    feats2 = feats2 / jnp.linalg.norm(feats2, axis=-1, keepdims=True)
    labels2 = jax.random.randint(k4, (bsz2,), 0, 4)

    loss2 = jax.block_until_ready(supcon_loss(feats2, labels=labels2))
    ref2 = _supcon_loss_ref(feats2, labels2)
    assert jnp.allclose(loss2, ref2, rtol=5e-2, atol=5e-2), (loss2, ref2)

    print("KERNEL_OK")
</pallas_src>

<mosaic_0001>
module attributes {stable_mosaic.version = 11 : i64} {
  func.func @_supcon_block_kernel(%arg0: i32, %arg1: memref<128x1xi32, #tpu.memory_space<vmem>>, %arg2: memref<1x128xi32, #tpu.memory_space<vmem>>, %arg3: memref<128x128xbf16, #tpu.memory_space<vmem>>, %arg4: memref<128x128xbf16, #tpu.memory_space<vmem>>, %arg5: memref<8x128xf32, #tpu.memory_space<vmem>>) attributes {dimension_semantics = [#tpu.dimension_semantics<parallel>], iteration_bounds = array<i64: 1>, scalar_prefetch = 0 : i64, scratch_operands = 0 : i64, tpu.core_type = #tpu.core_type<tc>, window_params = [{transform_indices = @transform_0, window_bounds = array<i64: 128, 1>}, {pipeline_mode = #tpu.pipeline_mode<synchronous>, transform_indices = @transform_1, window_bounds = array<i64: 1, 128>}, {transform_indices = @transform_2, window_bounds = array<i64: 128, 128>}, {pipeline_mode = #tpu.pipeline_mode<synchronous>, transform_indices = @transform_3, window_bounds = array<i64: 128, 128>}, {transform_indices = @transform_4, window_bounds = array<i64: 8, 128>}]} {
    %c0 = arith.constant 0 : index
    %c0_0 = arith.constant 0 : index
    %0 = vector.load %arg3[%c0, %c0_0] : memref<128x128xbf16, #tpu.memory_space<vmem>>, vector<128x128xbf16>
    %c0_1 = arith.constant 0 : index
    %c0_2 = arith.constant 0 : index
    %1 = vector.load %arg4[%c0_1, %c0_2] : memref<128x128xbf16, #tpu.memory_space<vmem>>, vector<128x128xbf16>
    %cst = arith.constant dense<0.000000e+00> : vector<128x128xf32>
    %2 = tpu.matmul %0, %1, %cst {dimension_numbers = #tpu.dot_dimension_numbers<[1], [1], [0], [0], [0, 0, 1, 0], [], []>} : vector<128x128xbf16>, vector<128x128xbf16>, vector<128x128xf32> -> vector<128x128xf32>
    %cst_3 = arith.constant 14.2857141 : f32
    %3 = vector.broadcast %cst_3 : f32 to vector<128x128xf32>
    %4 = arith.mulf %2, %3 : vector<128x128xf32>
    %5 = tpu.iota {dimensions = array<i32: 1>} : vector<128x128xi32>
    %6 = tpu.iota {dimensions = array<i32: 0>} : vector<128x128xi32>
    %c128_i32 = arith.constant 128 : i32
    %7 = arith.muli %arg0, %c128_i32 : i32
    %8 = vector.broadcast %7 : i32 to vector<128x128xi32>
    %9 = arith.addi %6, %8 : vector<128x128xi32>
    %c16_i32 = arith.constant 16 : i32
    %10 = vector.broadcast %c16_i32 : i32 to vector<128x128xi32>
    %11 = arith.cmpi slt, %5, %10 : vector<128x128xi32>
    %12 = arith.cmpi ne, %9, %5 : vector<128x128xi32>
    %13 = arith.andi %11, %12 : vector<128x128xi1>
    %cst_4 = arith.constant -1.000000e+30 : f32
    %14 = vector.broadcast %cst_4 : f32 to vector<128x128xf32>
    %15 = arith.select %11, %4, %14 : vector<128x128xi1>, vector<128x128xf32>
    %cst_5 = arith.constant dense<0xFF800000> : vector<128xf32>
    %16 = vector.multi_reduction <maximumf>, %15, %cst_5 [1] : vector<128x128xf32> to vector<128xf32>
    %17 = vector.shape_cast %16 : vector<128xf32> to vector<128x1xf32>
    %18 = vector.broadcast %17 : vector<128x1xf32> to vector<128x128xf32>
    %19 = arith.subf %4, %18 : vector<128x128xf32>
    %20 = math.exp %19 : vector<128x128xf32>
    %cst_6 = arith.constant 0.000000e+00 : f32
    %21 = vector.broadcast %cst_6 : f32 to vector<128x128xf32>
    %22 = arith.select %13, %20, %21 : vector<128x128xi1>, vector<128x128xf32>
    %cst_7 = arith.constant dense<0.000000e+00> : vector<128xf32>
    %23 = vector.multi_reduction <add>, %22, %cst_7 [1] : vector<128x128xf32> to vector<128xf32>
    %24 = vector.shape_cast %23 : vector<128xf32> to vector<128x1xf32>
    %25 = math.log %24 : vector<128x1xf32>
    %26 = vector.broadcast %25 : vector<128x1xf32> to vector<128x128xf32>
    %27 = arith.subf %19, %26 : vector<128x128xf32>
    %c0_8 = arith.constant 0 : index
    %c0_9 = arith.constant 0 : index
    %28 = vector.load %arg1[%c0_8, %c0_9] : memref<128x1xi32, #tpu.memory_space<vmem>>, vector<128x1xi32>
    %c0_10 = arith.constant 0 : index
    %c0_11 = arith.constant 0 : index
    %29 = vector.load %arg2[%c0_10, %c0_11] : memref<1x128xi32, #tpu.memory_space<vmem>>, vector<1x128xi32>
    %30 = vector.broadcast %28 : vector<128x1xi32> to vector<128x128xi32>
    %31 = vector.broadcast %29 : vector<1x128xi32> to vector<128x128xi32>
    %32 = arith.cmpi eq, %30, %31 : vector<128x128xi32>
    %33 = arith.andi %32, %13 : vector<128x128xi1>
    %cst_12 = arith.constant 1.000000e+00 : f32
    %cst_13 = arith.constant 0.000000e+00 : f32
    %34 = vector.broadcast %cst_12 : f32 to vector<128x128xf32>
    %35 = vector.broadcast %cst_13 : f32 to vector<128x128xf32>
    %36 = arith.select %33, %34, %35 : vector<128x128xi1>, vector<128x128xf32>
    %cst_14 = arith.constant dense<0.000000e+00> : vector<128xf32>
    %37 = vector.multi_reduction <add>, %36, %cst_14 [1] : vector<128x128xf32> to vector<128xf32>
    %38 = vector.shape_cast %37 : vector<128xf32> to vector<128x1xf32>
    %39 = arith.mulf %36, %27 : vector<128x128xf32>
    %cst_15 = arith.constant dense<0.000000e+00> : vector<128xf32>
    %40 = vector.multi_reduction <add>, %39, %cst_15 [1] : vector<128x128xf32> to vector<128xf32>
    %41 = vector.shape_cast %40 : vector<128xf32> to vector<128x1xf32>
    %cst_16 = arith.constant 1.000000e+00 : f32
    %42 = vector.broadcast %cst_16 : f32 to vector<128x1xf32>
    %43 = arith.maximumf %38, %42 : vector<128x1xf32>
    %44 = tpu.reciprocal %43 {approx = true} : vector<128x1xf32> -> vector<128x1xf32>
    %45 = arith.mulf %41, %44 : vector<128x1xf32>
    %46 = tpu.iota {dimensions = array<i32: 0>} : vector<128x1xi32>
    %c128_i32_17 = arith.constant 128 : i32
    %47 = arith.muli %arg0, %c128_i32_17 : i32
    %48 = vector.broadcast %47 : i32 to vector<128x1xi32>
    %49 = arith.addi %46, %48 : vector<128x1xi32>
    %c16_i32_18 = arith.constant 16 : i32
    %50 = vector.broadcast %c16_i32_18 : i32 to vector<128x1xi32>
    %51 = arith.cmpi slt, %49, %50 : vector<128x1xi32>
    %cst_19 = arith.constant 0.000000e+00 : f32
    %52 = vector.broadcast %cst_19 : f32 to vector<128x1xf32>
    %53 = arith.cmpf ogt, %38, %52 : vector<128x1xf32>
    %54 = arith.andi %51, %53 : vector<128x1xi1>
    %cst_20 = arith.constant 0.000000e+00 : f32
    %55 = vector.broadcast %cst_20 : f32 to vector<128x1xf32>
    %56 = arith.select %54, %45, %55 : vector<128x1xi1>, vector<128x1xf32>
    %57 = vector.shape_cast %56 : vector<128x1xf32> to vector<1x128x1xf32>
    %cst_21 = arith.constant dense<0.000000e+00> : vector<1xf32>
    %58 = vector.multi_reduction <add>, %57, %cst_21 [1, 2] : vector<1x128x1xf32> to vector<1xf32>
    %59 = vector.shape_cast %58 : vector<1xf32> to vector<1x1x1xf32>
    %60 = vector.extract %59[0, 0, 0] : f32 from vector<1x1x1xf32>
    %cst_22 = arith.constant 0.000000e+00 : f32
    %61 = vector.broadcast %cst_22 : f32 to vector<8x128xf32>
    %62 = vector.broadcast %60 : f32 to vector<8x128xf32>
    %63 = arith.addf %61, %62 : vector<8x128xf32>
    %c0_23 = arith.constant 0 : index
    %c0_24 = arith.constant 0 : index
    %64 = vector.load %arg5[%c0_23, %c0_24] : memref<8x128xf32, #tpu.memory_space<vmem>>, vector<8x128xf32>
    tpu.vector_store %arg5[%c0_23, %c0_24], %63 {strides = array<i32>} : memref<8x128xf32, #tpu.memory_space<vmem>>, vector<8x128xf32>,
    return
  }
  func.func @transform_0(%arg0: i32) -> (i32, i32) {
    %c0_i32 = arith.constant 0 : i32
    %c0_i32_0 = arith.constant 0 : i32
    return %arg0, %c0_i32 : i32, i32
  }
  func.func @transform_1(%arg0: i32) -> (i32, i32) {
    %c0_i32 = arith.constant 0 : i32
    %c0_i32_0 = arith.constant 0 : i32
    %c0_i32_1 = arith.constant 0 : i32
    return %c0_i32, %c0_i32_0 : i32, i32
  }
  func.func @transform_2(%arg0: i32) -> (i32, i32) {
    %c0_i32 = arith.constant 0 : i32
    %c0_i32_0 = arith.constant 0 : i32
    return %arg0, %c0_i32 : i32, i32
  }
  func.func @transform_3(%arg0: i32) -> (i32, i32) {
    %c0_i32 = arith.constant 0 : i32
    %c0_i32_0 = arith.constant 0 : i32
    %c0_i32_1 = arith.constant 0 : i32
    return %c0_i32, %c0_i32_0 : i32, i32
  }
  func.func @transform_4(%arg0: i32) -> (i32, i32) {
    %c0_i32 = arith.constant 0 : i32
    %c0_i32_0 = arith.constant 0 : i32
    return %arg0, %c0_i32 : i32, i32
  }
}

</mosaic_0001>

<bundles_post_ra>
// kernel: tpu_custom_call.1
= control target key start
LH: loop header
LB: loop body
LE: loop exit
PB: predicated region body
PF: predicated region fallthrough
CT: control target
= control target key end

     0   :  { %s1138_s0 = inlined_call_operand.vmem [shape: s32[128,1], index: 0, kind: input, shape index: {}]   ;;  %s1139_s1 = inlined_call_operand.vmem [shape: s32[1,128], index: 1, kind: input, shape index: {}]   ;;  %s1140_s2 = inlined_call_operand.vmem [shape: bf16[128,128], index: 2, kind: input, shape index: {}]   ;;  %s1141_s3 = inlined_call_operand.vmem [shape: bf16[128,128], index: 3, kind: input, shape index: {}]   ;;  %s1142_s4 = inlined_call_operand.hbm [shape: f32[8,128], index: 4, kind: output, shape index: {}]  }
   0x1   :  { %v977_v0 = vld [vmem:[%s1141_s3] sm:$0xff]   ;;  %v978_v1 = vld [vmem:[%s1141_s3 + $0x8] sm:$0xff]   ;;  %v979_v2 = vld [vmem:[%s1141_s3 + $0x10] sm:$0xff]  }
   0x2   :  { %922 = vmatprep.subr.bf16.mxu0 %v977_v0  ;;  %954 = vmatprep.subr.bf16.mxu1 %v977_v0  ;;  %v985_v3 = vld [vmem:[%s1140_s2] sm:$0xff]  }
   0x3   :  { %923 = vmatpush3.bf16.xpose.msra.mxu0 %v977_v0  ;;  %962 = vmatpush3.bf16.xpose.msra.mxu1 %v977_v0 }
   0x4   :  { %924 = vmatprep.subr.bf16.mxu0 %v978_v1  ;;  %955 = vmatprep.subr.bf16.mxu1 %v978_v1 }
   0x5   :  { %938 = vmatprep.mubr.bf16.mxu0 %v985_v3 }
   0xb   :  { %925 = vmatpush3.bf16.xpose.msra.mxu0 %v978_v1  ;;  %963 = vmatpush3.bf16.xpose.msra.mxu1 %v978_v1 }
   0xc   :  { %926 = vmatprep.subr.bf16.mxu0 %v979_v2  ;;  %956 = vmatprep.subr.bf16.mxu1 %v979_v2 }
   0xd   :  { %9 = vsyncpa [#allocation3], 0  ;;  %v980_v4 = vld [vmem:[%s1141_s3 + $0x18] sm:$0xff]   ;;  %v981_v5 = vld [vmem:[%s1141_s3 + $0x20] sm:$0xff]   ;;  %v260_v10 = vlaneseq  ;;  %v1029_v21 = vmov 0   ;;  %v1030_v38 = vmov 0.0  }
   0xe   :  { %v982_v6 = vld [vmem:[%s1141_s3 + $0x28] sm:$0xff]   ;;  %v983_v7 = vld [vmem:[%s1141_s3 + $0x30] sm:$0xff]   ;;  %v984_v8 = vld [vmem:[%s1141_s3 + $0x38] sm:$0xff]   ;;  %975 = vset.pattern.permute.xlu0 %v1029_v21  ;;  %976 = vset.pattern.permute.xlu1 %v1029_v21  ;;  %vm831_vm10 = vcmask 7168  }
   0xf   :  { %v986_v9 = vld [vmem:[%s1140_s2 + $0x8] sm:$0xff]   ;;  %v261_v11 = vand.u32 127, %v260_v10  ;;  %v522_v20 = vld [vmem:[%s1138_s0] sm:$0xff]  ;;  %v263_v27 = vshrl.u32 %v260_v10, 7  ;;  %v989_v54 = vld [vmem:[%s1140_s2 + $0x10] sm:$0xff]  }
  0x10   :  { %v523_v35 = vld [vmem:[%s1138_s0 + $0x8] sm:$0xff]  ;;  %v905_v36 = vld [vmem:[%s1139_s1] ss:$0 sm:$0xff]  ;;  %v990_v55 = vld [vmem:[%s1140_s2 + $0x30] sm:$0xff]  }
  0x11   :  { %vm297_vm0 = vcmp.lt.s32.totalorder %v261_v11, 16  ;;  %vm298_vm1 = vcmp.ne.s32.totalorder %v263_v27, %v261_v11  ;;  %v264_v29 = vadd.s32 8, %v263_v27  ;;  %v987_v40 = vld [vmem:[%s1140_s2 + $0x20] sm:$0xff]   ;;  %v988_v53 = vld [vmem:[%s1140_s2 + $0x28] sm:$0xff]   ;;  %v991_v56 = vld [vmem:[%s1140_s2 + $0x18] sm:$0xff]  }
  0x12   :  { %vm314_vm2 = vmand %vm297_vm0, %vm298_vm1  ;;  %946 = vmatprep.mubr.bf16.mxu1 %v987_v40  ;;  %v992_v57 = vld [vmem:[%s1140_s2 + $0x38] sm:$0xff]   ;;  %s1031_s2 = smov [#allocation2]  }
  0x13   :  { %927 = vmatpush3.bf16.xpose.msra.mxu0 %v979_v2  ;;  %964 = vmatpush3.bf16.xpose.msra.mxu1 %v979_v2  ;;  %vm299_vm3 = vcmp.ne.s32.totalorder %v264_v29, %v261_v11  ;;  %s881_s24 = sshll.u32 %s1031_s2, 4  ;;  %s882_s24 = int_to_ptr.vmem [resolvable:$true] %s881_s24 }
  0x14   :  { %928 = vmatprep.subr.bf16.mxu0 %v980_v4  ;;  %957 = vmatprep.subr.bf16.mxu1 %v980_v4  ;;  %vm1094_vm4 = vmand %vm297_vm0, %vm299_vm3  ;;  %s1005_s26 = scalar_lea.vmem %s882_s24, 128  ;;  %p1010_p1 = scmp.lt.s32.totalorder %s882_s24, %s882_s24 }
  0x15   :  { %p1006_p0 = scmp.ne.s32.totalorder %s882_s24, %s1005_s26  ;;  %p1011_p2 = scmp.lt.s32.totalorder %s1005_s26, %s1005_s26 }
  0x17   :  { %p1012_p3 = por %p1011_p2, %p1010_p1 }
  0x19   :  { %p1013_p4 = pnand %p1012_p3, %p1006_p0 }
  0x1b   :  { %929 = vmatpush3.bf16.xpose.msra.mxu0 %v980_v4  ;;  %965 = vmatpush3.bf16.xpose.msra.mxu1 %v980_v4 }
  0x1c   :  { %930 = vmatprep.subr.bf16.mxu0 %v981_v5  ;;  %958 = vmatprep.subr.bf16.mxu1 %v981_v5 }
  0x23   :  { %931 = vmatpush3.bf16.xpose.msra.mxu0 %v981_v5  ;;  %966 = vmatpush3.bf16.xpose.msra.mxu1 %v981_v5 }
  0x24   :  { %932 = vmatprep.subr.bf16.mxu0 %v982_v6  ;;  %959 = vmatprep.subr.bf16.mxu1 %v982_v6 }
  0x2b   :  { %933 = vmatpush3.bf16.xpose.msra.mxu0 %v982_v6  ;;  %967 = vmatpush3.bf16.xpose.msra.mxu1 %v982_v6 }
  0x2c   :  { %934 = vmatprep.subr.bf16.mxu0 %v983_v7  ;;  %960 = vmatprep.subr.bf16.mxu1 %v983_v7 }
  0x33   :  { %935 = vmatpush3.bf16.xpose.msra.mxu0 %v983_v7  ;;  %968 = vmatpush3.bf16.xpose.msra.mxu1 %v983_v7 }
  0x34   :  { %936 = vmatprep.subr.bf16.mxu0 %v984_v8  ;;  %961 = vmatprep.subr.bf16.mxu1 %v984_v8 }
  0x3b   :  { %937 = vmatpush3.bf16.xpose.msra.mxu0 %v984_v8  ;;  %969 = vmatpush3.bf16.xpose.msra.mxu1 %v984_v8 }
  0x42   :  { %939 = vmatmul.mubr.bf16.vlgmr.msra.gmra.mrb[0].mxu0 %v986_v9  ;;  %947 = vmatmul.mubr.bf16.vlgmr.msra.gmra.mrb[0].mxu1 %v988_v53 }
  0x43   :  { %942 = vmatprep.mubr.bf16.mxu0 %v989_v54  ;;  %950 = vmatprep.mubr.bf16.mxu1 %v990_v55 }
  0x4a   :  { %943 = vmatmul.mubr.bf16.gmra.mrb[4].mxu0 %v991_v56  ;;  %951 = vmatmul.mubr.bf16.gmra.mrb[4].mxu1 %v992_v57 }
 0x115   :  { %v940_v12 = vpop.f32.mrb[0].mxu0  ;;  %v948_v9 = vpop.f32.mrb[0].mxu1 }
 0x116   :  { %v181_v13 = vpop.f32.mrb[1].mxu0  ;;  %v213_v10 = vpop.f32.mrb[1].mxu1 }
 0x117   :  { %v244_v14 = vmul.f32 14.285714, %v181_v13  ;;  %v941_v15 = vpop.f32.mrb[2].mxu0  ;;  %v949_v11 = vpop.f32.mrb[2].mxu1 }
 0x118   :  { %v184_v16 = vpop.f32.mrb[3].mxu0  ;;  %v216_v12 = vpop.f32.mrb[3].mxu1 }
 0x119   :  { %v245_v17 = vmul.f32 14.285714, %v184_v16  ;;  %v330_v18 = vsel %vm297_vm0, %v244_v14, -1e+30 }
 0x11a   :  { %346 = vmax.xlane.f32.xlu0 %v330_v18 }
 0x11b   :  { %v331_v19 = vsel %vm297_vm0, %v245_v17, -1e+30 }
 0x11d   :  { %v944_v13 = vpop.f32.mrb[4].mxu0 }
 0x11e   :  { %348 = vmax.xlane.f32.xlu0 %v331_v19  ;;  %v197_v15 = vpop.f32.mrb[5].mxu0 }
 0x134   :  { %540 = vperm.xlu0 %975, %v522_v20  }
 0x1a7   :  { %v347_v22 = vpop.xlane.xlu0 %346 }
 0x1a8   :  { %v378_v23 = vsub.f32 %v244_v14, %v347_v22  ;;  %v952_v14 = vpop.f32.mrb[4].mxu1 }
 0x1a9   :  { %v229_v16 = vpop.f32.mrb[5].mxu1 }
 0x1aa   :  { %v394_v24 = vmul.f32 1.442695, %v378_v23  ;;  %v953_v18 = vpop.f32.mrb[6].mxu1 }
 0x1ab   :  { %v349_v25 = vpop.xlane.xlu0 %348  ;;  %v232_v20 = vpop.f32.mrb[7].mxu1 }
 0x1ac   :  { %993 = vpow2.f32 %v394_v24  ;;  %v379_v26 = vsub.f32 %v245_v17, %v349_v25  ;;  %v945_v17 = vpop.f32.mrb[6].mxu0 }
 0x1ad   :  { %v200_v19 = vpop.f32.mrb[7].mxu0 }
 0x1ae   :  { %v396_v28 = vmul.f32 1.442695, %v379_v26 }
 0x1b0   :  { %995 = vpow2.f32 %v396_v28 }
 0x1b3   :  { %v541_v37 = vpop.permute.xlu0 %540 }
 0x1b4   :  { %vm591_vm5 = vcmp.eq.s32.totalorder %v541_v37, %v905_v36 }
 0x1b5   :  { %vm607_vm6 = vmand %vm591_vm5, %vm314_vm2 }
 0x1b6   :  { %v994_v30 = vpop.eup %993  ;;  %v623_v39 = vsel %vm607_vm6, 1.0, %v1030_v38 }
 0x1b7   :  { %v426_v31 = vsel %vm314_vm2, %v994_v30, 0.0 }
 0x1b8   :  { %442 = vadd.xlane.f32.xlu1 %v426_v31 }
 0x1ba   :  { %v996_v33 = vpop.eup %995 }
 0x1bb   :  { %v427_v34 = vsel %vm1094_vm4, %v996_v33, 0.0 }
 0x1bc   :  { %444 = vadd.xlane.f32.xlu1 %v427_v34 }
 0x1cd   :  { %543 = vperm.xlu1 %976, %v523_v35  }
 0x1f1   :  { %639 = vadd.xlane.f32.xlu1 %v623_v39 }
 0x245   :  { %v443_v41 = vpop.xlane.xlu1 %442 }
 0x246   :  { %997 = vlog2.f32 %v443_v41 }
 0x249   :  { %v445_v42 = vpop.xlane.xlu1 %444 }
 0x24a   :  { %999 = vlog2.f32 %v445_v42 }
 0x24d   :  { %v544_v43 = vpop.permute.xlu1 %543 }
 0x24e   :  { %vm592_vm7 = vcmp.eq.s32.totalorder %v544_v43, %v905_v36 }
 0x24f   :  { %vm608_vm8 = vmand %vm592_vm7, %vm1094_vm4 }
 0x250   :  { %v998_v44 = vpop.eup %997  ;;  %v624_v45 = vsel %vm608_vm8, 1.0, %v1030_v38 }
 0x251   :  { %v475_v46 = vmul.f32 0.6931472, %v998_v44  ;;  %641 = vadd.xlane.f32.xlu0 %v624_v45 }
 0x253   :  { %v506_v47 = vsub.f32 %v378_v23, %v475_v46 }
 0x254   :  { %v1000_v48 = vpop.eup %999 }
 0x255   :  { %v477_v49 = vmul.f32 0.6931472, %v1000_v48  ;;  %v671_v50 = vmul.f32 %v623_v39, %v506_v47 }
 0x257   :  { %687 = vadd.xlane.f32.xlu1 %v671_v50  ;;  %v507_v51 = vsub.f32 %v379_v26, %v477_v49 }
 0x259   :  { %v672_v52 = vmul.f32 %v624_v45, %v507_v51 }
 0x25b   :  { %689 = vadd.xlane.f32.xlu1 %v672_v52 }
 0x27e   :  { %v640_v58 = vpop.xlane.xlu1 %639 }
 0x27f   :  { %v719_v59 = vmax.f32 %v640_v58, 1.0  ;;  %vm783_vm9 = vcmp.gt.f32.partialorder %v640_v58, 0.0 }
 0x281   :  { %1001 = vrcp.f32 %v719_v59 }
 0x28b   :  { %v1002_v62 = vpop.eup %1001 }
 0x2de   :  { %v642_v60 = vpop.xlane.xlu0 %641 }
 0x2df   :  { %v720_v61 = vmax.f32 %v642_v60, 1.0  ;;  %vm784_vm11 = vcmp.gt.f32.partialorder %v642_v60, 0.0 }
 0x2e1   :  { %1003 = vrcp.f32 %v720_v61 }
 0x2e4   :  { %v688_v63 = vpop.xlane.xlu1 %687 }
 0x2e5   :  { %v751_v0 = vmul.f32 %v1002_v62, %v688_v63 }
 0x2e7   :  { %v815_v3 = vsel %vm783_vm9, %v751_v0, 0.0 }
 0x2e8   :  { %v690_v2 = vpop.xlane.xlu1 %689  ;;  %v832_v6 = vsel %vm831_vm10, %v815_v3, 0.0 }
 0x2eb   :  { %v1004_v1 = vpop.eup %1003 }
 0x2ec   :  { %v752_v4 = vmul.f32 %v1004_v1, %v690_v2 }
 0x2ee   :  { %v816_v5 = vsel %vm784_vm11, %v752_v4, 0.0 }
 0x2ef   :  { %v833_v7 = vsel %vm831_vm10, %v816_v5, 0.0 }
 0x2f0   :  { %v834_v8 = vadd.f32 %v833_v7, %v832_v6 }
 0x2f2   :  { %863 = vadd.xlane.f32.xlu1 %v834_v8 }
 0x37f   :  { %v864_v21 = vpop.xlane.xlu1 %863 }
 0x380   :  { %v865_v22 = vrot.slane %v864_v21, 4 }
 0x382   :  { %v866_v23 = vadd.f32 %v865_v22, %v864_v21 }
 0x384   :  { %v867_v24 = vrot.slane %v866_v23, 2 }
 0x386   :  { %v868_v25 = vadd.f32 %v867_v24, %v866_v23 }
 0x388   :  { %v869_v26 = vrot.slane %v868_v25, 1 }
 0x38a   :  { %v870_v27 = vadd.f32 %v869_v26, %v868_v25 }
 0x38c   :  { %970 = vpush %v870_v27 }
 0x3bd   :  { %s971_s25 = spop %970 }
 0x3be   :  { %v872_v28 = vstv %s971_s25 }
 0x3bf   :  { %874 = vst [vmem:[#allocation2] sm:$0xff] %v872_v28 }
 0x3c0   :  { %1016 = shalt.err (!%p1013_p4)
}
 0x3c1   :  { %s1017_s29 = scalar_lea.hbm %s1142_s4, 128 }
 0x3c2   :  { %p1018_p5 = scmp.ne.s32.totalorder %s1142_s4, %s1017_s29  ;;  %p1021_p6 = scmp.lt.u32.totalorder %s1017_s29, %s1142_s4 }
 0x3c4   :  { %p1023_p7 = pnand %p1021_p6, %p1018_p5 }
 0x3c6   :  { %1026 = shalt.err (!%p1023_p7)
}
 0x3c7   :  { %884 = dma.vmem_to_hbm [thread:$0]  %s882_s24, 128, %s1142_s4, [#allocation3]  }
 0x3c8   :  { %1027 = dma.done.wait [#allocation3], 128  }
 0x3c9   :  { %1028 = vsyncadd [#allocation3], 4294967168 }
 0x3ca   :  { %888 = vsyncpa [#allocation3], 1 }

</bundles_post_ra>
